<compile_context>
chip_gen: v7x
topology: tpu7x:2x2x1
jax: 0.10.0
libtpu: 0.0.40
codegen_flags: <defaults>
</compile_context>

<pallas_src>
import math

import jax
import jax.numpy as jnp
from jax.experimental import pallas as pl
from jax.experimental.pallas import tpu as pltpu

_LANE = 128


def _drop_path_kernel(x_ref, scale_ref, o_ref):
    # x_ref:     (TB, TC)  flattened features for TB samples
    # scale_ref: (TB, 1)   per-sample scale = mask / keep_prob (broadcast along lanes)
    # o_ref:     (TB, TC)
    o_ref[...] = x_ref[...] * scale_ref[...]


def _vmem_capacity_bytes():
    """Physical VMEM per TensorCore; conservative (v7x) default if the query fails."""
    try:
        return int(pltpu.get_tpu_info().vmem_capacity_bytes)
    except Exception:  # pragma: no cover - e.g. interpret mode / older jax
        return 64 * 1024 * 1024


def _sublane(itemsize):
    # 8 rows for f32, 16 for bf16, 32 for int8 (sub-32-bit dtypes pack along sublanes).
    return max(8, 32 // max(itemsize, 1))


def _pick_tiles(B, F, itemsize, budget, sublane):
    """Choose (TB, TC) obeying TPU block rules (last dim multiple of 128 or == F,
    second-to-last a multiple of the sublane packing or == B), growing both until the
    per-tile byte budget is reached."""
    min_rows = B if B <= sublane else sublane

    if F % _LANE == 0:
        tc_cap = max(_LANE, (budget // (min_rows * itemsize)) // _LANE * _LANE)
        TC = min(F, tc_cap)
    else:
        # Ragged feature axis: take it whole (caller guarantees min_rows*F fits budget,
        # otherwise it pads F up to a lane multiple before calling us).
        TC = F

    if B <= sublane:
        TB = B
    else:
        rows_cap = max(sublane, (budget // (TC * itemsize)) // sublane * sublane)
        TB = B if rows_cap >= B else rows_cap   # full batch, or a sublane multiple
    return TB, TC


def _ensure_multi_step(B, F, TB, TC, sublane):
    """Guarantee >= 2 grid steps when cheaply splittable, so a 2-TC chip (v7x) can
    shard the ("parallel","parallel") grid across both TensorCores."""
    if (-(-B // TB)) * (-(-F // TC)) >= 2:
        return TB, TC
    if F % _LANE == 0 and F >= 2 * _LANE:
        half = -(-(F // 2) // _LANE) * _LANE          # ceil(F/2) rounded up to lanes
        return TB, half
    if TB == B and B > sublane:
        half = max(sublane, (-(-(B // 2) // sublane)) * sublane)
        if half < B:
            return half, TC
    return TB, TC


def drop_path(x, drop_prob, key, training=True, donate_x=False):
    """Stochastic-depth forward. x: (B, ...) with a per-sample drop mask.

    `drop_prob` / `training` are Python-level flags (mark static if jitting).
    `donate_x=True` aliases the output onto the input buffer (input_output_aliases),
    halving peak HBM footprint when the caller no longer needs x.
    """
    if drop_prob == 0.0 or not training:
        return x

    keep_prob = 1.0 - drop_prob
    B = x.shape[0]
    F = math.prod(x.shape[1:])
    itemsize = jnp.dtype(x.dtype).itemsize
    sublane = _sublane(itemsize)

    # Per-sample binary keep mask (same math as torch: floor(keep_prob + U[0,1))).
    u = jax.random.uniform(key, (B,), dtype=x.dtype)
    scale = (jnp.floor(jnp.asarray(keep_prob, x.dtype) + u)
             / jnp.asarray(keep_prob, x.dtype)).astype(x.dtype)

    # Tiny / lane-sparse inputs: a Pallas launch would be all masked-store and
    # per-step overhead; let XLA fuse the broadcast multiply instead.
    if F < _LANE or B * F < 8 * _LANE * sublane:
        return x * scale.reshape((B,) + (1,) * (x.ndim - 1))

    vmem_cap = _vmem_capacity_bytes()
    # Per-tile budget: ~1/16 of physical VMEM (in+out double-buffered = 4 tiles,
    # i.e. <= 1/4 of VMEM). -> 4 MiB tiles on v7x (64 MiB), 8 MiB on v5e/v6e (128 MiB).
    budget = max(1 << 20, min(8 << 20, vmem_cap // 16))

    x2 = x.reshape(B, F)
    Fk = F
    min_rows = B if B <= sublane else sublane
    if F % _LANE != 0 and min_rows * F * itemsize > budget:
        # Bound the ragged-F path: pad the feature axis to a lane multiple so the
        # block can be tiled along lanes and can never exceed the VMEM budget.
        Fk = -(-F // _LANE) * _LANE
        x2 = jnp.pad(x2, ((0, 0), (0, Fk - F)))

    TB, TC = _pick_tiles(B, Fk, itemsize, budget, sublane)
    TB, TC = _ensure_multi_step(B, Fk, TB, TC, sublane)
    grid = (pl.cdiv(B, TB), pl.cdiv(Fk, TC))

    # Explicit scoped-VMEM limit: in+out tiles double-buffered + scale column + headroom,
    # never below the 32 MiB default, never above 3/4 of physical VMEM.
    tile_bytes = TB * TC * itemsize
    needed = 4 * tile_bytes + 4 * TB * itemsize + (4 << 20)
    vmem_limit = int(min(max(needed, 32 << 20), (vmem_cap * 3) // 4))

    extra = {"input_output_aliases": {0: 0}} if donate_x else {}

    out2 = pl.pallas_call(
        _drop_path_kernel,
        out_shape=jax.ShapeDtypeStruct((B, Fk), x.dtype),
        grid=grid,
        in_specs=[
            pl.BlockSpec((TB, TC), lambda i, j: (i, j)),   # lane-dense data tile
            pl.BlockSpec((TB, 1), lambda i, j: (i, 0)),    # per-sample scale column
        ],
        out_specs=pl.BlockSpec((TB, TC), lambda i, j: (i, j)),
        compiler_params=pltpu.CompilerParams(
            dimension_semantics=("parallel", "parallel"),
            vmem_limit_bytes=vmem_limit),
        **extra,
    )(x2, scale.reshape(B, 1))

    if Fk != F:
        out2 = out2[:, :F]
    return out2.reshape(x.shape)


def _drop_path_ref(x, drop_prob, key, training=True):
    """Pure-JAX reference for correctness checking (same RNG draw as drop_path)."""
    if drop_prob == 0.0 or not training:
        return x
    keep_prob = 1.0 - drop_prob
    B = x.shape[0]
    u = jax.random.uniform(key, (B,), dtype=x.dtype)
    mask = jnp.floor(jnp.asarray(keep_prob, x.dtype) + u)
    mask = mask.reshape((B,) + (1,) * (x.ndim - 1))
    return x / jnp.asarray(keep_prob, x.dtype) * mask


if __name__ == "__main__":
    root = jax.random.PRNGKey(0)
    k_x, k_m, k_x2, k_m2, k_x3, k_m3 = jax.random.split(root, 6)
    drop_prob = 0.3

    # (1) Swin-like (batch, tokens, hidden) shape large enough to hit the Pallas path
    #     (F = 49*128 = 6272, lane-aligned; grid is split to >= 2 steps for v7x).
    B, N, C = 16, 49, 128
    x = jax.random.normal(k_x, (B, N, C), dtype=jnp.float32)
    out = jax.block_until_ready(drop_path(x, drop_prob, k_m, training=True))
    ref = _drop_path_ref(x, drop_prob, k_m, training=True)
    assert out.shape == x.shape and out.dtype == x.dtype
    assert jnp.allclose(out, ref, atol=1e-6, rtol=1e-6)

    # (2) Ragged feature size (F = 33*160 = 5280, not a multiple of 128) -> bounded
    #     full-F block path through the kernel.
    x2 = jax.random.normal(k_x2, (8, 33, 160), dtype=jnp.float32)
    out2 = jax.block_until_ready(drop_path(x2, drop_prob, k_m2, training=True))
    ref2 = _drop_path_ref(x2, drop_prob, k_m2, training=True)
    assert jnp.allclose(out2, ref2, atol=1e-6, rtol=1e-6)

    # (3) Tiny shape -> fused XLA fallback (no kernel launch needed).
    x3 = jax.random.normal(k_x3, (2, 8, 32), dtype=jnp.float32)
    out3 = jax.block_until_ready(drop_path(x3, drop_prob, k_m3, training=True))
    ref3 = _drop_path_ref(x3, drop_prob, k_m3, training=True)
    assert jnp.allclose(out3, ref3, atol=1e-6, rtol=1e-6)

    # (4) Eval mode / drop_prob == 0: identity.
    assert jnp.array_equal(drop_path(x3, drop_prob, k_m3, training=False), x3)
    assert jnp.array_equal(drop_path(x3, 0.0, k_m3, training=True), x3)

    print("KERNEL_OK")
</pallas_src>

<mosaic_0001>
module attributes {stable_mosaic.version = 11 : i64} {
  func.func @_drop_path_kernel(%arg0: i32, %arg1: i32, %arg2: memref<16x3200xf32, #tpu.memory_space<vmem>>, %arg3: memref<16x1xf32, #tpu.memory_space<vmem>>, %arg4: memref<16x3200xf32, #tpu.memory_space<vmem>>) attributes {dimension_semantics = [#tpu.dimension_semantics<parallel>, #tpu.dimension_semantics<parallel>], iteration_bounds = array<i64: 1, 2>, scalar_prefetch = 0 : i64, scratch_operands = 0 : i64, tpu.core_type = #tpu.core_type<tc>, window_params = [{transform_indices = @transform_0, window_bounds = array<i64: 16, 3200>}, {transform_indices = @transform_1, window_bounds = array<i64: 16, 1>}, {transform_indices = @transform_2, window_bounds = array<i64: 16, 3200>}]} {
    %c0 = arith.constant 0 : index
    %c0_0 = arith.constant 0 : index
    %0 = vector.load %arg2[%c0, %c0_0] : memref<16x3200xf32, #tpu.memory_space<vmem>>, vector<16x3200xf32>
    %c0_1 = arith.constant 0 : index
    %c0_2 = arith.constant 0 : index
    %1 = vector.load %arg3[%c0_1, %c0_2] : memref<16x1xf32, #tpu.memory_space<vmem>>, vector<16x1xf32>
    %2 = vector.broadcast %1 : vector<16x1xf32> to vector<16x3200xf32>
    %3 = arith.mulf %0, %2 : vector<16x3200xf32>
    %c0_3 = arith.constant 0 : index
    %c0_4 = arith.constant 0 : index
    %4 = vector.load %arg4[%c0_3, %c0_4] : memref<16x3200xf32, #tpu.memory_space<vmem>>, vector<16x3200xf32>
    tpu.vector_store %arg4[%c0_3, %c0_4], %3 {strides = array<i32>} : memref<16x3200xf32, #tpu.memory_space<vmem>>, vector<16x3200xf32>,
    return
  }
  func.func @transform_0(%arg0: i32, %arg1: i32) -> (i32, i32) {
    %c0_i32 = arith.constant 0 : i32
    return %arg0, %arg1 : i32, i32
  }
  func.func @transform_1(%arg0: i32, %arg1: i32) -> (i32, i32) {
    %c0_i32 = arith.constant 0 : i32
    %c0_i32_0 = arith.constant 0 : i32
    return %arg0, %c0_i32 : i32, i32
  }
  func.func @transform_2(%arg0: i32, %arg1: i32) -> (i32, i32) {
    %c0_i32 = arith.constant 0 : i32
    return %arg0, %arg1 : i32, i32
  }
}

</mosaic_0001>

<bundles_post_ra>
// kernel: tpu_custom_call.1
= control target key start
LH: loop header
LB: loop body
LE: loop exit
PB: predicated region body
PF: predicated region fallthrough
CT: control target
= control target key end

     0   :  { %7 = vsyncpa [#allocation3], 0  ;;  %s1095_s0 = inlined_call_operand.hbm [shape: f32[16,6272], index: 0, kind: input, shape index: {}]   ;;  %s1096_s1 = inlined_call_operand.vmem [shape: f32[16,1], index: 1, kind: input, shape index: {}]   ;;  %s1097_s2 = inlined_call_operand.hbm [shape: f32[16,6272], index: 2, kind: output, shape index: {}]  }
   0x1   :  { %9 = vsyncpa [#allocation3 + $0x1], 0 }
   0x2   :  { %10 = vsyncpa [#allocation4], 0 }
   0x3   :  { %12 = vsyncpa [#allocation4 + $0x1], 0  ;;  %s733_s9 = smov 0   ;;  %s735_s10 = smov 0  }
   0x4   :  { %s737_s11 = smov 0   ;;  %s739_s12 = smov 0  }
   0x5   :  { %s741_s13 = smov 0   ;;  %s743_s14 = smov 0  }
   0x6 LB: > { %s510_s15 = sadd.s32 4294967295, %s709_s14   ;;  %s511_s16 = sadd.s32 4294967294, %s709_s14   ;;  %s709_s14 = sphi %s743_s14, %s18_s14   ;;  %s705_s13 = sphi %s741_s13, %s1108_s13   ;;  %s701_s12 = sphi %s739_s12, %s1107_s12   ;;  %s697_s11 = sphi %s737_s11, %s1106_s11   ;;  %s693_s10 = sphi %s735_s10, %s1105_s10   ;;  %s689_s9 = sphi %s733_s9, %s1104_s9  }
   0x7   : > { %s27_s17 = sadd.s32 1, %s705_s13  ;;  %s39_s18 = sadd.s32 1, %s697_s11 }
   0x8   : > { %p28_p0 = scmp.ge.s32.totalorder %s27_s17, 2  ;;  %p46_p1 = scmp.ne.s32.totalorder %s697_s11, %s693_s10 }
   0x9   : > { %p47_p2 = scmp.eq.s32.totalorder %s709_s14, 0  ;;  %p52_p3 = scmp.ne.s32.totalorder %s693_s10, %s689_s9 }
   0xa   : > { %s1110_s17 = smov (%p28_p0, %s27_s17), 0  ;;  %p53_p5 = scmp.eq.s32.totalorder %s510_s15, 0 }
   0xb   : > { %p48_p4 = por %p47_p2, %p46_p1  ;;  %s35_s19 = ssub.s32 %s705_s13, %s1110_s17 }
   0xc   : > { %p104_p6 = scmp.eq.s32.totalorder %s510_s15, 1  ;;  %p37_p7 = scmp.eq.s32.totalorder %s35_s19, 0 }
   0xd   : > { %p776_p8 = por %p53_p5, %p52_p3  ;;  %p110_p10 = scmp.eq.s32.totalorder %s511_s16, 1 }
   0xe   : > { %p780_p9 = por %p104_p6, %p46_p1  ;;  %p1098_p12 = scmp.ge.s32.totalorder %s709_s14, 2 }
   0xf   : > { %s785_s22 = scalar_select %p37_p7, %s697_s11, %s39_s18  }
  0x10   : > { %p787_p11 = por %p110_p10, %p52_p3  ;;  %135 = sbr.rel (%p1098_p12) target bundleno = 58 (0x3a), region = 20 }
  0x12   : > { %s1101_s23 = scalar_select %p787_p11, 1, 0 }
  0x17   : > { %138 = sbr.rel (!%p48_p4) target bundleno = 58 (0x3a), region = 24  ;;  %s139_s24 = sand.u32 (%p48_p4), 1, %s697_s11  }
  0x18   : > { %s145_s25 = smul.u32 (%p48_p4), 25, %s705_s13  ;;  %s802_s30 = scalar_lea.sflag (%p48_p4), [#allocation3], %s139_s24 }
  0x19   : > { %s536_s26 = smul.u32 (%p48_p4), 400, %s139_s24 }
  0x1a   : > { %s146_s27 = ssub.s32 (%p48_p4), 49, %s145_s25 }
  0x1b   : > { %p147_p13 = scmp.lt.s32.totalorder (%p48_p4), %s146_s27, 25  ;;  %s143_s3 = scalar_lea.vmem (%p48_p4), [#allocation2], %s536_s26 }
  0x1e   : > { %s1112_s27 = smov (!%p147_p13, %s146_s27), 25 }
  0x1f   : > { %s799_s28 = sshll.u32 %s1112_s27, 8 }
  0x20   : > { %s151_s29 = ssub.s32 6400, %s799_s28 }
  0x21   : > { %152 = vsyncadd %s802_s30, %s151_s29  ;;  %p516_p0 = scmp.ne.s32.totalorder %s799_s28, 0  ;;  %s530_s4 = smul.u32 3200, %s705_s13 }
  0x22   : > { %s518_s5 = sshll.u32 %s1112_s27, 3  ;;  %s160_s6 = sshll.u32 %s143_s3, 4  ;;  %s813_s6 = int_to_ptr.vmem [resolvable:$true] %s160_s6 }
  0x23   : > { %s811_s15 = scalar_lea.hbm %s1095_s0, %s530_s4  ;;  %s603_s24 = scalar_lea.hbm %s1095_s0, 12544 }
  0x24   : > { %s599_s16 = scalar_lea.hbm %s811_s15, %s799_s28  ;;  %p604_p4 = scmp.lt.u32.totalorder %s811_s15, %s1095_s0 }
  0x25   : > { %p600_p1 = scmp.ne.s32.totalorder %s811_s15, %s599_s16  ;;  %p605_p5 = scmp.lt.u32.totalorder %s603_s24, %s599_s16 }
  0x26   : > { %p607_p7 = scmp.lt.u32.totalorder %s599_s16, %s811_s15 }
  0x27   : > { %p601_p2 = pnand %p600_p1, %p516_p0  ;;  %p606_p6 = por %p605_p5, %p604_p4 }
  0x29   : > { %p602_p3 = pneg %p601_p2  ;;  %p608_p10 = por %p607_p7, %p606_p6 }
  0x2b   : > { %p609_p13 = pnand %p608_p10, %p602_p3 }
  0x2d   : > { %612 = shalt.err (!%p609_p13)
}
  0x2e   : > { %s613_s29 = scalar_lea.vmem %s813_s6, %s799_s28  ;;  %s711_s3 = smov [#allocation2]  }
  0x2f   : > { %p614_p1 = scmp.ne.s32.totalorder %s813_s6, %s613_s29  ;;  %s617_s4 = sshll.u32 %s711_s3, 4  ;;  %s618_s4 = int_to_ptr.vmem [resolvable:$false] %s617_s4 }
  0x30   : > { %s619_s7 = scalar_lea.vmem %s618_s4, 12800  ;;  %p620_p11 = scmp.lt.s32.totalorder %s813_s6, %s618_s4 }
  0x31   : > { %p615_p2 = pnand %p614_p1, %p516_p0  ;;  %p621_p4 = scmp.lt.s32.totalorder %s619_s7, %s613_s29 }
  0x33   : > { %p616_p12 = pneg %p615_p2  ;;  %p622_p5 = por %p621_p4, %p620_p11 }
  0x35   : > { %p623_p6 = pnand %p622_p5, %p616_p12 }
  0x37   : > { %626 = shalt.err (!%p623_p6)
}
  0x38   : > { %s712_s8 = smov 6272   ;;  %s713_s16 = smov 3200  }
  0x39   : > { %166 = dma.hbm_to_vmem [thread:$0]  (%p516_p0), %s811_s15, %s799_s28, %s813_s6, %s802_s30, %s712_s8, %s713_s16, %s518_s5  }
  0x3a PF: > { %p521_p3 = scmp.ge.s32.totalorder %s709_s14, 1  ;;  %p168_p7 = scmp.lt.s32.totalorder %s709_s14, 3 }
  0x3c   : > { %p169_p11 = pnand %p521_p3, %p168_p7 }
  0x3d   : > { %s845_s18 = sand.u32 (!%p169_p11), 1, %s693_s10  }
  0x3e   : > { %172 = sbr.rel (%p169_p11) target bundleno = 257 (0x101), region = 28  ;;  %s175_s24 = scalar_lea.sflag (!%p169_p11), [#allocation3], %s845_s18 }
  0x3f   : > { %s537_s19 = smul.u32 (!%p169_p11), 400, %s845_s18 }
  0x41   : > { %s851_s27 = scalar_lea.vmem (!%p169_p11), [#allocation2], %s537_s19 }
  0x45   : > { %680 = dma.done.wait (%p776_p8), %s175_s24, 6400  }
  0x46   : > { %682 = vsyncadd (%p776_p8), %s175_s24, 4294960896  ;;  %v714_v0 = vmov 0   ;;  %v272_v1 = vld [vmem:[%s1096_s1] sm:$0xff]  ;;  %v273_v2 = vld [vmem:[%s1096_s1 + $0x8] sm:$0xff]  ;;  %s906_s6 = scalar_lea.vmem [#allocation5], %s537_s19  ;;  %s385_s15 = scalar_lea.sflag [#allocation4], %s845_s18 }
  0x47   : > { %598 = vset.pattern.permute.xlu0 %v714_v0  ;;  %v222_v3 = vld [vmem:[%s851_s27] sm:$0xff]  ;;  %v223_v4 = vld [vmem:[%s851_s27 + $0x8] sm:$0xff]  ;;  %v224_v5 = vld [vmem:[%s851_s27 + $0x10] sm:$0xff]  ;;  %s393_s25 = smul.u32 (%p780_p9), 25, %s701_s12 }
  0x48   : > { %276 = vperm.xlu0 %598, %v272_v1   ;;  %v225_v6 = vld [vmem:[%s851_s27 + $0x18] sm:$0xff]  ;;  %v226_v7 = vld [vmem:[%s851_s27 + $0x20] sm:$0xff]  ;;  %v227_v8 = vld [vmem:[%s851_s27 + $0x28] sm:$0xff] }
  0x49   : > { %v228_v9 = vld [vmem:[%s851_s27 + $0x30] sm:$0xff]  ;;  %v229_v10 = vld [vmem:[%s851_s27 + $0x38] sm:$0xff]  ;;  %v230_v11 = vld [vmem:[%s851_s27 + $0x40] sm:$0xff]  ;;  %s394_s26 = ssub.s32 (%p780_p9), 49, %s393_s25 }
  0x4a   : > { %v231_v12 = vld [vmem:[%s851_s27 + $0x48] sm:$0xff]  ;;  %v232_v13 = vld [vmem:[%s851_s27 + $0x50] sm:$0xff]  ;;  %v233_v14 = vld [vmem:[%s851_s27 + $0x58] sm:$0xff]  ;;  %p395_p8 = scmp.lt.s32.totalorder (%p780_p9), %s394_s26, 25 }
  0x4b   : > { %v234_v15 = vld [vmem:[%s851_s27 + $0x60] sm:$0xff]  ;;  %v235_v16 = vld [vmem:[%s851_s27 + $0x68] sm:$0xff]  ;;  %v236_v17 = vld [vmem:[%s851_s27 + $0x70] sm:$0xff] }
  0x4c   : > { %281 = vperm.xlu0 %598, %v273_v2   ;;  %v237_v18 = vld [vmem:[%s851_s27 + $0x78] sm:$0xff]  ;;  %v238_v20 = vld [vmem:[%s851_s27 + $0x80] sm:$0xff]  ;;  %v239_v21 = vld [vmem:[%s851_s27 + $0x88] sm:$0xff] }
  0x4d   : > { %v240_v22 = vld [vmem:[%s851_s27 + $0x90] sm:$0xff]  ;;  %v241_v23 = vld [vmem:[%s851_s27 + $0x98] sm:$0xff]  ;;  %v242_v24 = vld [vmem:[%s851_s27 + $0xa0] sm:$0xff] }
  0x4e   : > { %v243_v25 = vld [vmem:[%s851_s27 + $0xa8] sm:$0xff]  ;;  %v244_v26 = vld [vmem:[%s851_s27 + $0xb0] sm:$0xff]  ;;  %v245_v27 = vld [vmem:[%s851_s27 + $0xb8] sm:$0xff] }
  0x4f   : > { %v246_v32 = vld [vmem:[%s851_s27 + $0xc0] sm:$0xff]  ;;  %v247_v37 = vld [vmem:[%s851_s27 + $0xc8] sm:$0xff]  ;;  %v248_v38 = vld [vmem:[%s851_s27 + $0xd0] sm:$0xff] }
  0x50   : > { %v249_v43 = vld [vmem:[%s851_s27 + $0xd8] sm:$0xff]  ;;  %v250_v44 = vld [vmem:[%s851_s27 + $0xe0] sm:$0xff]  ;;  %v251_v45 = vld [vmem:[%s851_s27 + $0xe8] sm:$0xff] }
  0x51   : > { %v252_v51 = vld [vmem:[%s851_s27 + $0xf0] sm:$0xff]  ;;  %v253_v52 = vld [vmem:[%s851_s27 + $0xf8] sm:$0xff]  ;;  %v254_v53 = vld [vmem:[%s851_s27 + $0x100] sm:$0xff] }
  0x52   : > { %v255_v58 = vld [vmem:[%s851_s27 + $0x108] sm:$0xff]  ;;  %v256_v59 = vld [vmem:[%s851_s27 + $0x110] sm:$0xff]  ;;  %v257_v60 = vld [vmem:[%s851_s27 + $0x118] sm:$0xff] }
  0x53   : > { %v258_v1 = vld [vmem:[%s851_s27 + $0x120] sm:$0xff]  ;;  %v259_v2 = vld [vmem:[%s851_s27 + $0x128] sm:$0xff] }
  0xc7   : > { %v879_v19 = vpop.permute.xlu0 %276 }
  0xc8   : > { %v284_v28 = vmul.f32 %v879_v19, %v222_v3  ;;  %v285_v29 = vmul.f32 %v879_v19, %v223_v4  ;;  %v286_v30 = vmul.f32 %v879_v19, %v224_v5  ;;  %v287_v31 = vmul.f32 %v879_v19, %v225_v6  ;;  %v260_v3 = vld [vmem:[%s851_s27 + $0x130] sm:$0xff]  ;;  %v261_v5 = vld [vmem:[%s851_s27 + $0x138] sm:$0xff]  ;;  %v262_v6 = vld [vmem:[%s851_s27 + $0x140] sm:$0xff] }
  0xc9   : > { %v288_v33 = vmul.f32 %v879_v19, %v226_v7  ;;  %v289_v34 = vmul.f32 %v879_v19, %v227_v8  ;;  %v290_v35 = vmul.f32 %v879_v19, %v228_v9  ;;  %v291_v36 = vmul.f32 %v879_v19, %v229_v10  ;;  %v263_v7 = vld [vmem:[%s851_s27 + $0x148] sm:$0xff] }
  0xca   : > { %v292_v39 = vmul.f32 %v879_v19, %v230_v11  ;;  %v293_v40 = vmul.f32 %v879_v19, %v231_v12  ;;  %v294_v41 = vmul.f32 %v879_v19, %v232_v13  ;;  %v295_v42 = vmul.f32 %v879_v19, %v233_v14  ;;  %334 = vst [vmem:[%s906_s6] sm:$0xff] %v284_v28  ;;  %v264_v11 = vld [vmem:[%s851_s27 + $0x150] sm:$0xff]  ;;  %v265_v12 = vld [vmem:[%s851_s27 + $0x158] sm:$0xff]  ;;  %v266_v13 = vld [vmem:[%s851_s27 + $0x160] sm:$0xff] }
  0xcb   : > { %335 = vst [vmem:[%s906_s6 + $0x8] sm:$0xff] %v285_v29  ;;  %336 = vst [vmem:[%s906_s6 + $0x10] sm:$0xff] %v286_v30  ;;  %v296_v46 = vmul.f32 %v879_v19, %v234_v15  ;;  %v297_v47 = vmul.f32 %v879_v19, %v235_v16  ;;  %v298_v48 = vmul.f32 %v879_v19, %v236_v17  ;;  %v923_v50 = vpop.permute.xlu0 %281 }
  0xcc   : > { %337 = vst [vmem:[%s906_s6 + $0x18] sm:$0xff] %v287_v31  ;;  %v299_v49 = vmul.f32 %v879_v19, %v237_v18  ;;  %338 = vst [vmem:[%s906_s6 + $0x20] sm:$0xff] %v288_v33  ;;  %v300_v54 = vmul.f32 %v879_v19, %v238_v20  ;;  %v301_v55 = vmul.f32 %v879_v19, %v239_v21  ;;  %v267_v18 = vld [vmem:[%s851_s27 + $0x168] sm:$0xff]  ;;  %v269_v20 = vld [vmem:[%s851_s27 + $0x178] sm:$0xff] }
  0xcd   : > { %339 = vst [vmem:[%s906_s6 + $0x28] sm:$0xff] %v289_v34  ;;  %340 = vst [vmem:[%s906_s6 + $0x30] sm:$0xff] %v290_v35  ;;  %v302_v56 = vmul.f32 %v879_v19, %v240_v22  ;;  %v303_v57 = vmul.f32 %v879_v19, %v241_v23  ;;  %v304_v61 = vmul.f32 %v879_v19, %v242_v24 }
  0xce   : > { %341 = vst [vmem:[%s906_s6 + $0x38] sm:$0xff] %v291_v36  ;;  %342 = vst [vmem:[%s906_s6 + $0x40] sm:$0xff] %v292_v39  ;;  %v305_v62 = vmul.f32 %v879_v19, %v243_v25  ;;  %v306_v63 = vmul.f32 %v879_v19, %v244_v26  ;;  %v307_v0 = vmul.f32 %v879_v19, %v245_v27  ;;  %v270_v25 = vld [vmem:[%s851_s27 + $0x180] sm:$0xff]  ;;  %v271_v26 = vld [vmem:[%s851_s27 + $0x188] sm:$0xff] }
  0xcf   : > { %343 = vst [vmem:[%s906_s6 + $0x48] sm:$0xff] %v293_v40  ;;  %344 = vst [vmem:[%s906_s6 + $0x50] sm:$0xff] %v294_v41  ;;  %v308_v4 = vmul.f32 %v879_v19, %v246_v32  ;;  %v309_v8 = vmul.f32 %v923_v50, %v247_v37  ;;  %v310_v9 = vmul.f32 %v923_v50, %v248_v38  ;;  %v268_v19 = vld [vmem:[%s851_s27 + $0x170] sm:$0xff] }
  0xd0   : > { %345 = vst [vmem:[%s906_s6 + $0x58] sm:$0xff] %v295_v42  ;;  %346 = vst [vmem:[%s906_s6 + $0x60] sm:$0xff] %v296_v46  ;;  %v311_v10 = vmul.f32 %v923_v50, %v249_v43  ;;  %v312_v14 = vmul.f32 %v923_v50, %v250_v44  ;;  %v313_v15 = vmul.f32 %v923_v50, %v251_v45 }
  0xd1   : > { %347 = vst [vmem:[%s906_s6 + $0x68] sm:$0xff] %v297_v47  ;;  %348 = vst [vmem:[%s906_s6 + $0x70] sm:$0xff] %v298_v48  ;;  %v314_v16 = vmul.f32 %v923_v50, %v252_v51  ;;  %v315_v17 = vmul.f32 %v923_v50, %v253_v52  ;;  %v316_v21 = vmul.f32 %v923_v50, %v254_v53 }
  0xd2   : > { %349 = vst [vmem:[%s906_s6 + $0x78] sm:$0xff] %v299_v49  ;;  %350 = vst [vmem:[%s906_s6 + $0x80] sm:$0xff] %v300_v54  ;;  %v317_v22 = vmul.f32 %v923_v50, %v255_v58  ;;  %v318_v23 = vmul.f32 %v923_v50, %v256_v59  ;;  %v319_v24 = vmul.f32 %v923_v50, %v257_v60 }
  0xd3   : > { %351 = vst [vmem:[%s906_s6 + $0x88] sm:$0xff] %v301_v55  ;;  %352 = vst [vmem:[%s906_s6 + $0x90] sm:$0xff] %v302_v56  ;;  %v320_v27 = vmul.f32 %v923_v50, %v258_v1  ;;  %v321_v28 = vmul.f32 %v923_v50, %v259_v2  ;;  %v322_v29 = vmul.f32 %v923_v50, %v260_v3 }
  0xd4   : > { %353 = vst [vmem:[%s906_s6 + $0x98] sm:$0xff] %v303_v57  ;;  %354 = vst [vmem:[%s906_s6 + $0xa0] sm:$0xff] %v304_v61  ;;  %v323_v30 = vmul.f32 %v923_v50, %v261_v5  ;;  %v324_v31 = vmul.f32 %v923_v50, %v262_v6  ;;  %v325_v32 = vmul.f32 %v923_v50, %v263_v7 }
  0xd5   : > { %355 = vst [vmem:[%s906_s6 + $0xa8] sm:$0xff] %v305_v62  ;;  %356 = vst [vmem:[%s906_s6 + $0xb0] sm:$0xff] %v306_v63  ;;  %v326_v33 = vmul.f32 %v923_v50, %v264_v11  ;;  %v327_v34 = vmul.f32 %v923_v50, %v265_v12  ;;  %v328_v35 = vmul.f32 %v923_v50, %v266_v13 }
  0xd6   : > { %357 = vst [vmem:[%s906_s6 + $0xb8] sm:$0xff] %v307_v0  ;;  %358 = vst [vmem:[%s906_s6 + $0xc0] sm:$0xff] %v308_v4  ;;  %v329_v36 = vmul.f32 %v923_v50, %v267_v18  ;;  %v330_v37 = vmul.f32 %v923_v50, %v268_v19  ;;  %v331_v38 = vmul.f32 %v923_v50, %v269_v20 }
  0xd7   : > { %359 = vst [vmem:[%s906_s6 + $0xc8] sm:$0xff] %v309_v8  ;;  %360 = vst [vmem:[%s906_s6 + $0xd0] sm:$0xff] %v310_v9  ;;  %v332_v39 = vmul.f32 %v923_v50, %v270_v25  ;;  %v333_v40 = vmul.f32 %v923_v50, %v271_v26 }
  0xd8   : > { %361 = vst [vmem:[%s906_s6 + $0xd8] sm:$0xff] %v311_v10  ;;  %362 = vst [vmem:[%s906_s6 + $0xe0] sm:$0xff] %v312_v14 }
  0xd9   : > { %363 = vst [vmem:[%s906_s6 + $0xe8] sm:$0xff] %v313_v15  ;;  %364 = vst [vmem:[%s906_s6 + $0xf0] sm:$0xff] %v314_v16 }
  0xda   : > { %365 = vst [vmem:[%s906_s6 + $0xf8] sm:$0xff] %v315_v17  ;;  %366 = vst [vmem:[%s906_s6 + $0x100] sm:$0xff] %v316_v21 }
  0xdb   : > { %367 = vst [vmem:[%s906_s6 + $0x108] sm:$0xff] %v317_v22  ;;  %368 = vst [vmem:[%s906_s6 + $0x110] sm:$0xff] %v318_v23 }
  0xdc   : > { %369 = vst [vmem:[%s906_s6 + $0x118] sm:$0xff] %v319_v24  ;;  %370 = vst [vmem:[%s906_s6 + $0x120] sm:$0xff] %v320_v27 }
  0xdd   : > { %371 = vst [vmem:[%s906_s6 + $0x128] sm:$0xff] %v321_v28  ;;  %372 = vst [vmem:[%s906_s6 + $0x130] sm:$0xff] %v322_v29  ;;  %391 = sbr.rel (!%p780_p9) target bundleno = 257 (0x101), region = 36 }
  0xde   : > { %373 = vst [vmem:[%s906_s6 + $0x138] sm:$0xff] %v323_v30  ;;  %374 = vst [vmem:[%s906_s6 + $0x140] sm:$0xff] %v324_v31 }
  0xdf   : > { %375 = vst [vmem:[%s906_s6 + $0x148] sm:$0xff] %v325_v32  ;;  %376 = vst [vmem:[%s906_s6 + $0x150] sm:$0xff] %v326_v33 }
  0xe0   : > { %377 = vst [vmem:[%s906_s6 + $0x158] sm:$0xff] %v327_v34  ;;  %378 = vst [vmem:[%s906_s6 + $0x160] sm:$0xff] %v328_v35 }
  0xe1   : > { %379 = vst [vmem:[%s906_s6 + $0x168] sm:$0xff] %v329_v36  ;;  %380 = vst [vmem:[%s906_s6 + $0x170] sm:$0xff] %v330_v37 }
  0xe2   : > { %381 = vst [vmem:[%s906_s6 + $0x178] sm:$0xff] %v331_v38  ;;  %382 = vst [vmem:[%s906_s6 + $0x180] sm:$0xff] %v332_v39 }
  0xe3   : > { %383 = vst [vmem:[%s906_s6 + $0x188] sm:$0xff] %v333_v40 }
  0xe4   : > { %s1114_s26 = smov (!%p395_p8, %s394_s26), 25 }
  0xe5   : > { %s1028_s29 = sshll.u32 %s1114_s26, 8 }
  0xe6   : > { %s399_s3 = ssub.s32 6400, %s1028_s29 }
  0xe7   : > { %400 = vsyncadd %s385_s15, %s399_s3  ;;  %p523_p9 = scmp.ne.s32.totalorder %s1028_s29, 0  ;;  %s533_s21 = smul.u32 3200, %s701_s12 }
  0xe8   : > { %s525_s4 = sshll.u32 %s1114_s26, 3  ;;  %s408_s7 = sshll.u32 %s906_s6, 4  ;;  %s1042_s7 = int_to_ptr.vmem [resolvable:$true] %s408_s7 }
  0xe9   : > { %s1040_s19 = scalar_lea.hbm %s1097_s2, %s533_s21  ;;  %s627_s24 = scalar_lea.vmem %s1042_s7, %s1028_s29 }
  0xea   : > { %p628_p12 = scmp.ne.s32.totalorder %s1042_s7, %s627_s24  ;;  %s715_s27 = smov [#allocation5]  }
  0xeb   : > { %s631_s28 = sshll.u32 %s715_s27, 4  ;;  %s632_s28 = int_to_ptr.vmem [resolvable:$false] %s631_s28 }
  0xec   : > { %p629_p0 = pnand %p628_p12, %p523_p9  ;;  %s633_s12 = scalar_lea.vmem %s632_s28, 12800 }
  0xed   : > { %p634_p13 = scmp.lt.s32.totalorder %s1042_s7, %s632_s28  ;;  %p635_p1 = scmp.lt.s32.totalorder %s633_s12, %s627_s24 }
  0xee   : > { %p630_p10 = pneg %p629_p0 }
  0xef   : > { %p636_p2 = por %p635_p1, %p634_p13 }
  0xf1   : > { %p637_p4 = pnand %p636_p2, %p630_p10 }
  0xf3   : > { %640 = shalt.err (!%p637_p4)
}
  0xf4   : > { %s641_s30 = scalar_lea.hbm %s1040_s19, %s1028_s29  ;;  %s645_s6 = scalar_lea.hbm %s1097_s2, 12544 }
  0xf5   : > { %p642_p5 = scmp.ne.s32.totalorder %s1040_s19, %s641_s30  ;;  %p646_p7 = scmp.lt.u32.totalorder %s1040_s19, %s1097_s2 }
  0xf6   : > { %p647_p11 = scmp.lt.u32.totalorder %s645_s6, %s641_s30  ;;  %p649_p12 = scmp.lt.u32.totalorder %s641_s30, %s1040_s19 }
  0xf7   : > { %p643_p6 = pnand %p642_p5, %p523_p9 }
  0xf8   : > { %p648_p8 = por %p647_p11, %p646_p7 }
  0xf9   : > { %p644_p3 = pneg %p643_p6 }
  0xfa   : > { %p650_p0 = por %p649_p12, %p648_p8 }
  0xfc   : > { %p651_p10 = pnand %p650_p0, %p644_p3 }
  0xfe   : > { %654 = shalt.err (!%p651_p10)
}
  0xff   : > { %s716_s21 = smov 3200   ;;  %s717_s8 = smov 6272  }
 0x100   : > { %414 = dma.vmem_to_hbm [thread:$0]  (%p523_p9), %s1042_s7, %s1028_s29, %s1040_s19, %s385_s15, %s716_s21, %s717_s8, %s525_s4  }
 0x101 PF: > { %s423_s16 = sand.u32 1, %s689_s9   ;;  %p1102_p13 = scmp.ne.s32.totalorder %s1101_s23, 0 }
 0x102   : > { %p1103_p1 = scmp.ge.s32.totalorder %s709_s14, 2  ;;  %s424_s24 = scalar_lea.sflag [#allocation4], %s423_s16 }
 0x104   : > { %p541_p2 = pnand %p1103_p1, %p1102_p13 }
 0x106   : > { %684 = dma.done.wait (!%p541_p2), %s424_s24, 6400  }
 0x107   : > { %686 = vsyncadd (!%p541_p2), %s424_s24, 4294960896  ;;  %s18_s14 = sadd.s32 1, %s709_s14   ;;  %s1104_s9 = smov %s693_s10 }
 0x108   : > { %p15_p4 = scmp.ge.s32.totalorder %s18_s14, 4   ;;  %s1105_s10 = smov %s697_s11 }
 0x109   : > { %s1106_s11 = smov %s785_s22  ;;  %s1107_s12 = smov %s705_s13 }
 0x10a   : > { %s1108_s13 = smov %s1110_s17  ;;  %17 = sbr.rel (!%p15_p4) target bundleno = 6 (0x6), region = 76 }
 0x111   :  { %429 = vsyncpa [#allocation3], 1 }
 0x112   :  { %431 = vsyncpa [#allocation3 + $0x1], 1 }
 0x113   :  { %432 = vsyncpa [#allocation4], 1 }
 0x114   :  { %434 = vsyncpa [#allocation4 + $0x1], 1 }

</bundles_post_ra>
